<compile_context>
chip_gen: v7x
topology: tpu7x:2x2x1
jax: 0.10.0
libtpu: 0.0.40
codegen_flags: <defaults>
</compile_context>

<pallas_src>
import functools

import jax
import jax.numpy as jnp
from jax.experimental import pallas as pl
from jax.experimental.pallas import tpu as pltpu


def _round_up(v, m):
    return ((v + m - 1) // m) * m


def _fused_mlp_kernel(*refs, relu_flags, out_dims, n_valid, eps):
    """Fused (Linear -> training-mode BatchNorm1d -> optional ReLU) x L layers.

    refs = (x_ref, w_ref_0, ..., w_ref_{L-1}, gb_ref, o_ref)
      w_ref_i : [d_in_i, d_out_i]   pre-transposed, zero-padded to 128 lanes
      gb_ref  : [2*L, D_max]        rows 2i = gamma_i, 2i+1 = beta_i
    """
    n_layers = len(relu_flags)
    x_ref = refs[0]
    w_refs = refs[1:1 + n_layers]
    gb_ref = refs[1 + n_layers]
    o_ref = refs[-1]

    h = x_ref[...]
    n_pad = h.shape[0]
    inv_n = 1.0 / float(n_valid)

    # Hoisted constants (JAX does not CSE broadcasts inside the layer loop).
    ones_row = jnp.ones((1, n_pad), jnp.float32)          # MXU column-sum vector
    if n_pad != n_valid:
        row_ids = jax.lax.broadcasted_iota(jnp.int32, (n_pad, 1), 0)
        row_mask = (row_ids < n_valid).astype(jnp.float32)

    for li in range(n_layers):
        w_ref = w_refs[li]
        d_out = out_dims[li]

        # Linear.  Bias omitted: it cancels exactly under training-mode BN.
        y = jnp.dot(h.astype(w_ref.dtype), w_ref[...],
                    preferred_element_type=jnp.float32)          # [N, D] f32

        # Batch stats on the MXU (idle between layer matmuls).
        sum_y = jnp.dot(ones_row, y, preferred_element_type=jnp.float32)
        sum_y2 = jnp.dot(ones_row, y * y, preferred_element_type=jnp.float32)
        mean = sum_y * inv_n                                      # [1, D]
        var = jnp.maximum(sum_y2 * inv_n - mean * mean, 0.0)      # biased, >= 0

        gb = gb_ref[2 * li:2 * li + 2, :d_out].astype(jnp.float32)
        gamma = gb[0:1, :]
        beta = gb[1:2, :]
        scale = gamma * jax.lax.rsqrt(var + eps)                  # [1, D]
        shift = beta - mean * scale
        out = y * scale + shift

        if relu_flags[li]:
            out = jnp.maximum(out, 0.0)

        if li + 1 < n_layers and n_pad != n_valid:
            # Keep padded batch rows exactly zero so the next layer's batch
            # statistics are unaffected.
            out = out * row_mask

        h = out

    o_ref[...] = h.astype(o_ref.dtype)


def fused_mlp(x, ws, gb, relu_flags, out_dim, *, eps=1e-5):
    """One pallas_call for the whole MLP branch.

    ws: tuple of pre-transposed, lane-padded weights [d_in_pad, d_out_pad].
    gb: stacked BN params [2*len(ws), D_max].
    Returns [n, out_dim] (padding sliced off outside the kernel).
    """
    n, d_in = x.shape
    in_pad = ws[0].shape[0]
    out_dims = tuple(int(w.shape[1]) for w in ws)
    out_pad = out_dims[-1]
    n_pad = _round_up(max(n, 1), 8)

    if (n_pad, in_pad) != (n, d_in):
        x = jnp.pad(x, ((0, n_pad - n), (0, in_pad - d_in)))

    kernel = functools.partial(
        _fused_mlp_kernel,
        relu_flags=tuple(bool(r) for r in relu_flags),
        out_dims=out_dims, n_valid=n, eps=eps)

    args = [x, *ws, gb]
    vmem = pl.BlockSpec(memory_space=pltpu.MemorySpace.VMEM)

    # Cost estimate (matmuls + MXU stats dots).
    flops = 0
    d_prev = in_pad
    for d_o in out_dims:
        flops += 2 * n_pad * d_prev * d_o          # linear
        flops += 2 * 2 * n_pad * d_o               # sum(y), sum(y*y) dots
        d_prev = d_o
    bytes_accessed = sum(int(a.size) * a.dtype.itemsize for a in args)
    bytes_accessed += n_pad * out_pad * x.dtype.itemsize
    transcendentals = sum(out_dims)                # one rsqrt lane per feature

    # VMEM budget: params/io + live f32 activations per layer, with margin.
    act_bytes = 4 * n_pad * max(out_dims) * 4 * len(out_dims)
    vmem_limit = int(min(max(2 * (bytes_accessed + act_bytes), 8 << 20), 48 << 20))

    out = pl.pallas_call(
        kernel,
        out_shape=jax.ShapeDtypeStruct((n_pad, out_pad), x.dtype),
        in_specs=[vmem] * len(args),
        out_specs=vmem,
        compiler_params=pltpu.CompilerParams(vmem_limit_bytes=vmem_limit),
        cost_estimate=pl.CostEstimate(
            flops=flops, transcendentals=transcendentals,
            bytes_accessed=bytes_accessed),
    )(*args)
    return out[:n, :out_dim]


def _init_linear_t(key, in_dim, out_dim, pad_in, pad_out, dtype=jnp.float32):
    """PyTorch-style uniform(+/- 1/sqrt(in_dim)) init, stored TRANSPOSED
    ([in_dim, out_dim]) and zero-padded to (pad_in, pad_out)."""
    kw, kb = jax.random.split(key)
    bound = 1.0 / (in_dim ** 0.5)
    w = jax.random.uniform(kw, (in_dim, out_dim), dtype, -bound, bound)
    b = jax.random.uniform(kb, (out_dim,), dtype, -bound, bound)  # inert under BN
    if pad_in > in_dim or pad_out > out_dim:
        w = jnp.pad(w, ((0, pad_in - in_dim), (0, pad_out - out_dim)))
    return w, b


def _init_bn_stacked(num_layers, width, dtype=jnp.float32):
    """BatchNorm1d defaults (gamma=1, beta=0) for `num_layers` layers, packed
    as one [2*num_layers, width] slab (single DMA per call)."""
    rows = []
    for _ in range(num_layers):
        rows.append(jnp.ones((width,), dtype))    # gamma
        rows.append(jnp.zeros((width,), dtype))   # beta
    return jnp.stack(rows, axis=0)


class ProjectionMLP:
    """JAX/Pallas port of projection_MLP (training-mode BatchNorm1d)."""

    def __init__(self, key, in_dim, hidden_dim=64, out_dim=64,
                 param_dtype=jnp.float32):
        # param_dtype=jnp.bfloat16 halves weight DMA bytes and hits the native
        # bf16 MXU on v6e/v7x; BN math / accumulation stays f32 either way.
        ip = _round_up(in_dim, 128)
        hp = _round_up(hidden_dim, 128)
        op = _round_up(out_dim, 128)
        self.in_dim, self.hidden_dim, self.out_dim = in_dim, hidden_dim, out_dim

        k1, k2, k3, k4 = jax.random.split(key, 4)
        # layer1: Linear(in, hidden) + BN(hidden) + ReLU
        self.w1, self.b1 = _init_linear_t(k1, in_dim, hidden_dim, ip, hp, param_dtype)
        # layer2: Linear(hidden, hidden) + BN(hidden) + ReLU
        self.w2, self.b2 = _init_linear_t(k2, hidden_dim, hidden_dim, hp, hp, param_dtype)
        # layer3: Linear(hidden, out) + BN(hidden)  (no ReLU)
        # NOTE: original module uses BatchNorm1d(hidden_dim) here; valid only
        # while hidden_dim == out_dim (default config), same as PyTorch.
        self.w3, self.b3 = _init_linear_t(k3, hidden_dim, out_dim, hp, op, param_dtype)
        # layer4: Linear(in, out) + BN(out)  (no ReLU)
        self.w4, self.b4 = _init_linear_t(k4, in_dim, out_dim, ip, op, param_dtype)

        # One stacked gamma/beta slab per branch (single parameter DMA).
        d3 = max(hp, op)
        self.gb_3 = _init_bn_stacked(3, d3)   # layer1, layer2, layer3
        self.gb_2 = _init_bn_stacked(2, d3)   # layer1, layer3
        self.gb_1 = _init_bn_stacked(1, op)   # layer4

        self.num_layers = 1

    def set_layers(self, num_layers):
        self.num_layers = num_layers

    def __call__(self, x):
        if self.num_layers == 3:
            assert self.hidden_dim == self.out_dim, "layer3 BN requires hidden==out"
            ws, gb, relu = (self.w1, self.w2, self.w3), self.gb_3, (True, True, False)
        elif self.num_layers == 2:
            assert self.hidden_dim == self.out_dim, "layer3 BN requires hidden==out"
            ws, gb, relu = (self.w1, self.w3), self.gb_2, (True, False)
        elif self.num_layers == 1:
            ws, gb, relu = (self.w4,), self.gb_1, (False,)
        else:
            raise Exception
        return fused_mlp(x, ws, gb, relu, self.out_dim)


def _ref_layer(h, w_pad, b, d_in, d_out, relu, eps=1e-5):
    """Pure-JAX reference: Linear (WITH bias) + training-mode BN + opt ReLU."""
    w = w_pad[:d_in, :d_out].astype(jnp.float32)
    y = h.astype(jnp.float32) @ w + b[:d_out].astype(jnp.float32)
    mean = jnp.mean(y, axis=0, keepdims=True)
    var = jnp.mean((y - mean) ** 2, axis=0, keepdims=True)   # biased
    out = (y - mean) * jax.lax.rsqrt(var + eps)               # gamma=1, beta=0
    return jnp.maximum(out, 0.0) if relu else out


if __name__ == "__main__":
    key = jax.random.PRNGKey(0)
    k_param, k_x = jax.random.split(key)

    batch, in_dim, hidden_dim, out_dim = 128, 32, 64, 64
    x = jax.random.normal(k_x, (batch, in_dim), jnp.float32)

    mlp = ProjectionMLP(k_param, in_dim, hidden_dim, out_dim)

    # num_layers == 1 (default): layer4 = Linear + BN
    out1 = jax.block_until_ready(mlp(x))
    assert out1.shape == (batch, out_dim)
    assert bool(jnp.all(jnp.isfinite(out1)))
    ref1 = _ref_layer(x, mlp.w4, mlp.b4, in_dim, out_dim, relu=False)
    assert bool(jnp.allclose(out1, ref1, atol=5e-2, rtol=5e-2))

    # num_layers == 2: layer1 -> layer3
    mlp.set_layers(2)
    out2 = jax.block_until_ready(mlp(x))
    assert out2.shape == (batch, out_dim)
    assert bool(jnp.all(jnp.isfinite(out2)))

    # num_layers == 3: layer1 -> layer2 -> layer3
    mlp.set_layers(3)
    out3 = jax.block_until_ready(mlp(x))
    assert out3.shape == (batch, out_dim)
    assert bool(jnp.all(jnp.isfinite(out3)))
    h = _ref_layer(x, mlp.w1, mlp.b1, in_dim, hidden_dim, relu=True)
    h = _ref_layer(h, mlp.w2, mlp.b2, hidden_dim, hidden_dim, relu=True)
    ref3 = _ref_layer(h, mlp.w3, mlp.b3, hidden_dim, out_dim, relu=False)
    assert bool(jnp.allclose(out3, ref3, atol=5e-2, rtol=5e-2))

    # Ragged batch (exercises batch padding + in-kernel row masking).
    xr = jax.random.normal(jax.random.PRNGKey(1), (60, in_dim), jnp.float32)
    outr = jax.block_until_ready(mlp(xr))
    assert outr.shape == (60, out_dim)
    assert bool(jnp.all(jnp.isfinite(outr)))
    hr = _ref_layer(xr, mlp.w1, mlp.b1, in_dim, hidden_dim, relu=True)
    hr = _ref_layer(hr, mlp.w2, mlp.b2, hidden_dim, hidden_dim, relu=True)
    refr = _ref_layer(hr, mlp.w3, mlp.b3, hidden_dim, out_dim, relu=False)
    assert bool(jnp.allclose(outr, refr, atol=5e-2, rtol=5e-2))

    print("KERNEL_OK")
</pallas_src>

<mosaic_0001>
module attributes {stable_mosaic.version = 11 : i64} {
  func.func @_fused_mlp_kernel(%arg0: memref<128x128xf32, #tpu.memory_space<vmem>>, %arg1: memref<128x128xf32, #tpu.memory_space<vmem>>, %arg2: memref<2x128xf32, #tpu.memory_space<vmem>>, %arg3: memref<128x128xf32, #tpu.memory_space<vmem>>) attributes {dimension_semantics = [], scalar_prefetch = 0 : i64, scratch_operands = 0 : i64, tpu.core_type = #tpu.core_type<tc>} {
    %c0 = arith.constant 0 : index
    %c0_0 = arith.constant 0 : index
    %0 = vector.load %arg0[%c0, %c0_0] : memref<128x128xf32, #tpu.memory_space<vmem>>, vector<128x128xf32>
    %cst = arith.constant 1.000000e+00 : f32
    %1 = vector.broadcast %cst : f32 to vector<1x128xf32>
    %c0_1 = arith.constant 0 : index
    %c0_2 = arith.constant 0 : index
    %2 = vector.load %arg1[%c0_1, %c0_2] : memref<128x128xf32, #tpu.memory_space<vmem>>, vector<128x128xf32>
    %cst_3 = arith.constant dense<0.000000e+00> : vector<128x128xf32>
    %3 = tpu.matmul %0, %2, %cst_3 {dimension_numbers = #tpu.dot_dimension_numbers<[1], [0], [0], [1], [0, 0, 1, 1], [], []>} : vector<128x128xf32>, vector<128x128xf32>, vector<128x128xf32> -> vector<128x128xf32>
    %cst_4 = arith.constant dense<0.000000e+00> : vector<1x128xf32>
    %4 = tpu.matmul %1, %3, %cst_4 {dimension_numbers = #tpu.dot_dimension_numbers<[1], [0], [0], [1], [0, 0, 1, 1], [], []>} : vector<1x128xf32>, vector<128x128xf32>, vector<1x128xf32> -> vector<1x128xf32>
    %5 = arith.mulf %3, %3 : vector<128x128xf32>
    %cst_5 = arith.constant dense<0.000000e+00> : vector<1x128xf32>
    %6 = tpu.matmul %1, %5, %cst_5 {dimension_numbers = #tpu.dot_dimension_numbers<[1], [0], [0], [1], [0, 0, 1, 1], [], []>} : vector<1x128xf32>, vector<128x128xf32>, vector<1x128xf32> -> vector<1x128xf32>
    %cst_6 = arith.constant 7.812500e-03 : f32
    %7 = vector.broadcast %cst_6 : f32 to vector<1x128xf32>
    %8 = arith.mulf %4, %7 : vector<1x128xf32>
    %cst_7 = arith.constant 7.812500e-03 : f32
    %9 = vector.broadcast %cst_7 : f32 to vector<1x128xf32>
    %10 = arith.mulf %6, %9 : vector<1x128xf32>
    %11 = arith.mulf %8, %8 : vector<1x128xf32>
    %12 = arith.subf %10, %11 : vector<1x128xf32>
    %cst_8 = arith.constant 0.000000e+00 : f32
    %13 = vector.broadcast %cst_8 : f32 to vector<1x128xf32>
    %14 = arith.maximumf %12, %13 : vector<1x128xf32>
    %c0_9 = arith.constant 0 : index
    %c0_10 = arith.constant 0 : index
    %15 = vector.load %arg2[%c0_9, %c0_10] : memref<2x128xf32, #tpu.memory_space<vmem>>, vector<2x128xf32>
    %16 = vector.extract_strided_slice %15 {offsets = [0, 0], sizes = [1, 128], strides = [1, 1]} : vector<2x128xf32> to vector<1x128xf32>
    %17 = vector.extract_strided_slice %15 {offsets = [1, 0], sizes = [1, 128], strides = [1, 1]} : vector<2x128xf32> to vector<1x128xf32>
    %cst_11 = arith.constant 9.99999974E-6 : f32
    %18 = vector.broadcast %cst_11 : f32 to vector<1x128xf32>
    %19 = arith.addf %14, %18 : vector<1x128xf32>
    %20 = math.rsqrt %19 : vector<1x128xf32>
    %21 = arith.mulf %16, %20 : vector<1x128xf32>
    %22 = arith.mulf %8, %21 : vector<1x128xf32>
    %23 = arith.subf %17, %22 : vector<1x128xf32>
    %24 = vector.broadcast %21 : vector<1x128xf32> to vector<128x128xf32>
    %25 = arith.mulf %3, %24 : vector<128x128xf32>
    %26 = vector.broadcast %23 : vector<1x128xf32> to vector<128x128xf32>
    %27 = arith.addf %25, %26 : vector<128x128xf32>
    %c0_12 = arith.constant 0 : index
    %c0_13 = arith.constant 0 : index
    %28 = vector.load %arg3[%c0_12, %c0_13] : memref<128x128xf32, #tpu.memory_space<vmem>>, vector<128x128xf32>
    tpu.vector_store %arg3[%c0_12, %c0_13], %27 {strides = array<i32>} : memref<128x128xf32, #tpu.memory_space<vmem>>, vector<128x128xf32>,
    return
  }
}

</mosaic_0001>

<bundles_post_ra>
// kernel: tpu_custom_call.1
= control target key start
LH: loop header
LB: loop body
LE: loop exit
PB: predicated region body
PF: predicated region fallthrough
CT: control target
= control target key end

     0   :  { %8 = vsyncpa [#allocation3], 0  ;;  %s984_s0 = inlined_call_operand.hbm [shape: f32[128,128], index: 0, kind: input, shape index: {}]   ;;  %s985_s1 = inlined_call_operand.hbm [shape: f32[128,128], index: 1, kind: input, shape index: {}]   ;;  %s986_s2 = inlined_call_operand.vmem [shape: f32[2,128], index: 2, kind: input, shape index: {}]   ;;  %s987_s3 = inlined_call_operand.hbm [shape: f32[128,128], index: 3, kind: output, shape index: {}]  }
   0x1   :  { %9 = vsyncpa [#allocation6], 0 }
   0x2   :  { %10 = vsyncpa [#allocation4], 0  ;;  %s819_s12 = smov [#allocation2]   ;;  %s747_s16 = scalar_lea.hbm %s984_s0, 2048 }
   0x3   :  { %s16_s13 = sshll.u32 %s819_s12, 4  ;;  %p748_p0 = scmp.ne.s32.totalorder %s984_s0, %s747_s16  ;;  %s17_s13 = int_to_ptr.vmem [resolvable:$true] %s16_s13 }
   0x4   :  { %p751_p1 = scmp.lt.u32.totalorder %s747_s16, %s984_s0 }
   0x6   :  { %p753_p2 = pnand %p751_p1, %p748_p0 }
   0x8   :  { %756 = shalt.err (!%p753_p2)
}
   0x9   :  { %s757_s21 = scalar_lea.vmem %s17_s13, 2048  ;;  %p762_p4 = scmp.lt.s32.totalorder %s17_s13, %s17_s13 }
   0xa   :  { %p758_p3 = scmp.ne.s32.totalorder %s17_s13, %s757_s21  ;;  %p763_p5 = scmp.lt.s32.totalorder %s757_s21, %s757_s21 }
   0xc   :  { %p764_p6 = por %p763_p5, %p762_p4 }
   0xe   :  { %p765_p7 = pnand %p764_p6, %p758_p3 }
  0x10   :  { %768 = shalt.err (!%p765_p7)
}
  0x11   :  { %s820_s22 = smov 128   ;;  %s821_s23 = smov 8  }
  0x12   :  { %22 = dma.hbm_to_vmem [thread:$0]  %s984_s0, 2048, %s17_s13, [#allocation3], %s820_s22, %s820_s22, %s821_s23  }
  0x13   :  { %s822_s26 = smov [#allocation5]   ;;  %s769_s30 = scalar_lea.hbm %s985_s1, 2048 }
  0x14   :  { %s28_s27 = sshll.u32 %s822_s26, 4  ;;  %p770_p8 = scmp.ne.s32.totalorder %s985_s1, %s769_s30  ;;  %s29_s27 = int_to_ptr.vmem [resolvable:$true] %s28_s27 }
  0x15   :  { %p773_p9 = scmp.lt.u32.totalorder %s769_s30, %s985_s1 }
  0x17   :  { %p775_p10 = pnand %p773_p9, %p770_p8 }
  0x19   :  { %778 = shalt.err (!%p775_p10)
}
  0x1a   :  { %s779_s8 = scalar_lea.vmem %s29_s27, 2048  ;;  %p784_p12 = scmp.lt.s32.totalorder %s29_s27, %s29_s27 }
  0x1b   :  { %p780_p11 = scmp.ne.s32.totalorder %s29_s27, %s779_s8  ;;  %p785_p13 = scmp.lt.s32.totalorder %s779_s8, %s779_s8 }
  0x1d   :  { %p786_p0 = por %p785_p13, %p784_p12 }
  0x1f   :  { %p787_p1 = pnand %p786_p0, %p780_p11 }
  0x21   :  { %790 = shalt.err (!%p787_p1)
}
  0x22   :  { %34 = dma.hbm_to_vmem [thread:$0]  %s985_s1, 2048, %s29_s27, [#allocation6], %s820_s22, %s820_s22, %s821_s23  }
  0x23   :  { %813 = dma.done.wait [#allocation3], 2048  }
  0x24   :  { %814 = vsyncadd [#allocation3], 4294965248 }
  0x25   :  { %815 = dma.done.wait [#allocation6], 2048  }
  0x26   :  { %816 = vsyncadd [#allocation6], 4294965248  ;;  %v59_v0 = vld [vmem:[#allocation5] sm:$0xff]  ;;  %v60_v1 = vld [vmem:[#allocation5 + $0x8] sm:$0xff]  ;;  %v823_v40 = vmov 0.0|0.0   ;;  %vm824_vm0 = vmmov 0  }
  0x27   :  { %v61_v2 = vld [vmem:[#allocation5 + $0x10] sm:$0xff]  ;;  %v656_v3 = vpack.c.bf16 %v60_v1, %v59_v0  ;;  %v62_v4 = vld [vmem:[#allocation5 + $0x18] sm:$0xff]  ;;  %v63_v6 = vld [vmem:[#allocation5 + $0x20] sm:$0xff]  ;;  %688 = vmatprep.subr.bf16.mxu1 %v823_v40  ;;  %v825_v41 = vmov 0.0  }
  0x28   :  { %v660_v5 = vpack.c.bf16 %v62_v4, %v61_v2  ;;  %v64_v7 = vld [vmem:[#allocation5 + $0x28] sm:$0xff]  ;;  %v43_v9 = vld [vmem:[#allocation2] sm:$0xff]  ;;  %v65_v10 = vld [vmem:[#allocation5 + $0x30] sm:$0xff]  ;;  %618 = vmatprep.mubr.msk.f32.mxu1 %vm824_vm0, %v825_v41 }
  0x29   :  { %657 = vmatprep.subr.bf16.mxu0 %v656_v3  ;;  %v664_v8 = vpack.c.bf16 %v64_v7, %v63_v6  ;;  %v66_v11 = vld [vmem:[#allocation5 + $0x38] sm:$0xff]  ;;  %562 = vmatprep.mubr.f32.mxu0 %v43_v9  ;;  %v67_v13 = vld [vmem:[#allocation5 + $0x40] sm:$0xff]  ;;  %v68_v14 = vld [vmem:[#allocation5 + $0x48] sm:$0xff] }
  0x2a   :  { %659 = vmatpush3.bf16.msra.mxu0 %v656_v3  ;;  %v668_v12 = vpack.c.bf16 %v66_v11, %v65_v10  ;;  %v672_v15 = vpack.c.bf16 %v68_v14, %v67_v13  ;;  %v69_v16 = vld [vmem:[#allocation5 + $0x50] sm:$0xff]  ;;  %v70_v17 = vld [vmem:[#allocation5 + $0x58] sm:$0xff]  ;;  %v71_v19 = vld [vmem:[#allocation5 + $0x60] sm:$0xff] }
  0x2b   :  { %661 = vmatprep.subr.bf16.mxu0 %v660_v5  ;;  %v676_v18 = vpack.c.bf16 %v70_v17, %v69_v16  ;;  %v72_v20 = vld [vmem:[#allocation5 + $0x68] sm:$0xff]  ;;  %v73_v22 = vld [vmem:[#allocation5 + $0x70] sm:$0xff]  ;;  %v74_v23 = vld [vmem:[#allocation5 + $0x78] sm:$0xff] }
  0x2c   :  { %v680_v21 = vpack.c.bf16 %v72_v20, %v71_v19  ;;  %v684_v24 = vpack.c.bf16 %v74_v23, %v73_v22  ;;  %v44_v25 = vld [vmem:[#allocation2 + $0x8] sm:$0xff]  ;;  %v45_v26 = vld [vmem:[#allocation2 + $0x10] sm:$0xff]  ;;  %v46_v27 = vld [vmem:[#allocation2 + $0x18] sm:$0xff] }
  0x2d   :  { %v47_v28 = vld [vmem:[#allocation2 + $0x20] sm:$0xff]  ;;  %v48_v29 = vld [vmem:[#allocation2 + $0x28] sm:$0xff]  ;;  %v49_v30 = vld [vmem:[#allocation2 + $0x30] sm:$0xff] }
  0x2e   :  { %663 = vmatpush3.bf16.msra.mxu0 %v660_v5  ;;  %v50_v31 = vld [vmem:[#allocation2 + $0x38] sm:$0xff]  ;;  %v51_v32 = vld [vmem:[#allocation2 + $0x40] sm:$0xff]  ;;  %v52_v33 = vld [vmem:[#allocation2 + $0x48] sm:$0xff] }
  0x2f   :  { %665 = vmatprep.subr.bf16.mxu0 %v664_v8  ;;  %v53_v34 = vld [vmem:[#allocation2 + $0x50] sm:$0xff]  ;;  %v54_v35 = vld [vmem:[#allocation2 + $0x58] sm:$0xff]  ;;  %v55_v36 = vld [vmem:[#allocation2 + $0x60] sm:$0xff] }
  0x30   :  { %v56_v37 = vld [vmem:[#allocation2 + $0x68] sm:$0xff]  ;;  %v57_v38 = vld [vmem:[#allocation2 + $0x70] sm:$0xff]  ;;  %v58_v39 = vld [vmem:[#allocation2 + $0x78] sm:$0xff] }
  0x32   :  { %667 = vmatpush3.bf16.msra.mxu0 %v664_v8 }
  0x33   :  { %669 = vmatprep.subr.bf16.mxu0 %v668_v12 }
  0x36   :  { %671 = vmatpush3.bf16.msra.mxu0 %v668_v12 }
  0x37   :  { %673 = vmatprep.subr.bf16.mxu0 %v672_v15 }
  0x3a   :  { %675 = vmatpush3.bf16.msra.mxu0 %v672_v15 }
  0x3b   :  { %677 = vmatprep.subr.bf16.mxu0 %v676_v18 }
  0x3e   :  { %679 = vmatpush3.bf16.msra.mxu0 %v676_v18 }
  0x3f   :  { %681 = vmatprep.subr.bf16.mxu0 %v680_v21 }
  0x42   :  { %683 = vmatpush3.bf16.msra.mxu0 %v680_v21 }
  0x43   :  { %685 = vmatprep.subr.bf16.mxu0 %v684_v24 }
  0x46   :  { %687 = vmatpush3.bf16.msra.mxu0 %v684_v24 }
  0x47   :  { %712 = vmatprep.subr.bf16.mxu0 %v823_v40 }
  0x49   :  { %563 = vmatmul.mubr.f32.vlgmr.msra.gmra.mrb[0].mxu0 %v44_v25 }
  0x4a   :  { %565 = vmatprep.mubr.f32.mxu0 %v45_v26  ;;  %v826_v26 = vmov 1.0  }
  0x4d   :  { %566 = vmatmul.mubr.f32.gmra.mrb[2].mxu0 %v46_v27 }
  0x4e   :  { %568 = vmatprep.mubr.f32.mxu0 %v47_v28 }
  0x51   :  { %569 = vmatmul.mubr.f32.gmra.mrb[4].mxu0 %v48_v29 }
  0x52   :  { %571 = vmatprep.mubr.f32.mxu0 %v49_v30 }
  0x55   :  { %572 = vmatmul.mubr.f32.gmra.mrb[6].mxu0 %v50_v31 }
  0x56   :  { %574 = vmatprep.mubr.f32.mxu0 %v51_v32 }
  0x59   :  { %575 = vmatmul.mubr.f32.gmra.mrb[8].mxu0 %v52_v33 }
  0x5a   :  { %577 = vmatprep.mubr.f32.mxu0 %v53_v34 }
  0x5d   :  { %578 = vmatmul.mubr.f32.gmra.mrb[10].mxu0 %v54_v35 }
  0x5e   :  { %580 = vmatprep.mubr.f32.mxu0 %v55_v36 }
  0x61   :  { %581 = vmatmul.mubr.f32.gmra.mrb[12].mxu0 %v56_v37  ;;  %v390_v37 = vlaneseq }
  0x62   :  { %583 = vmatprep.mubr.f32.mxu0 %v57_v38 }
  0x63   :  { %v391_v38 = vshrl.u32 %v390_v37, 7 }
  0x65   :  { %584 = vmatmul.mubr.f32.gmra.mrb[14].mxu0 %v58_v39  ;;  %v381_v39 = vld [vmem:[%s986_s2] sm:$0x3]  ;;  %s827_s2 = smov [#allocation7]  }
  0x66   :  { %653 = vmatprep.mubr.msk.f32.mxu0 %vm824_vm0, %v825_v41  ;;  %s451_s11 = sshll.u32 %s827_s2, 4  ;;  %s452_s11 = int_to_ptr.vmem [resolvable:$true] %s451_s11 }
  0x67   :  { %s791_s12 = scalar_lea.vmem %s452_s11, 2048  ;;  %p796_p3 = scmp.lt.s32.totalorder %s452_s11, %s452_s11 }
  0x68   :  { %p792_p2 = scmp.ne.s32.totalorder %s452_s11, %s791_s12  ;;  %p797_p4 = scmp.lt.s32.totalorder %s791_s12, %s791_s12 }
  0x6a   :  { %p798_p5 = por %p797_p4, %p796_p3 }
  0x6c   :  { %p799_p6 = pnand %p798_p5, %p792_p2 }
 0x11c   :  { %v880_v42 = vpop.f32.mrb[0].mxu0 }
 0x11d   :  { %v291_v43 = vmul.f32 %v880_v42, %v880_v42  ;;  %v884_v44 = vpop.f32.mrb[1].mxu0 }
 0x11e   :  { %v290_v45 = vmul.f32 %v884_v44, %v884_v44  ;;  %v689_v46 = vpack.c.bf16 %v880_v42, %v884_v44 }
 0x120   :  { %v713_v47 = vpack.c.bf16 %v291_v43, %v290_v45  ;;  %v890_v48 = vpop.f32.mrb[2].mxu0  ;;  %690 = vmatpush3.bf16.msra.mxu1 %v689_v46 }
 0x121   :  { %v293_v49 = vmul.f32 %v890_v48, %v890_v48  ;;  %v894_v50 = vpop.f32.mrb[3].mxu0  ;;  %691 = vmatprep.subr.bf16.mxu1 %v823_v40 }
 0x122   :  { %v692_v51 = vpack.c.bf16 %v890_v48, %v894_v50  ;;  %v292_v52 = vmul.f32 %v894_v50, %v894_v50  ;;  %714 = vmatpush3.bf16.msra.mxu0 %v713_v47  ;;  %v412_v47 = vsub.s32 1, %v391_v38 }
 0x123   :  { %715 = vmatprep.subr.bf16.mxu0 %v823_v40 }
 0x124   :  { %v716_v53 = vpack.c.bf16 %v293_v49, %v292_v52  ;;  %v902_v54 = vpop.f32.mrb[4].mxu0  ;;  %693 = vmatpush3.bf16.msra.mxu1 %v692_v51 }
 0x125   :  { %v295_v55 = vmul.f32 %v902_v54, %v902_v54  ;;  %v906_v56 = vpop.f32.mrb[5].mxu0  ;;  %694 = vmatprep.subr.bf16.mxu1 %v823_v40 }
 0x126   :  { %v695_v57 = vpack.c.bf16 %v902_v54, %v906_v56  ;;  %v294_v58 = vmul.f32 %v906_v56, %v906_v56  ;;  %717 = vmatpush3.bf16.msra.mxu0 %v716_v53 }
 0x127   :  { %718 = vmatprep.subr.bf16.mxu0 %v823_v40 }
 0x128   :  { %v719_v59 = vpack.c.bf16 %v295_v55, %v294_v58  ;;  %v914_v60 = vpop.f32.mrb[6].mxu0  ;;  %696 = vmatpush3.bf16.msra.mxu1 %v695_v57 }
 0x129   :  { %v297_v61 = vmul.f32 %v914_v60, %v914_v60  ;;  %v918_v62 = vpop.f32.mrb[7].mxu0  ;;  %697 = vmatprep.subr.bf16.mxu1 %v823_v40 }
 0x12a   :  { %v698_v63 = vpack.c.bf16 %v914_v60, %v918_v62  ;;  %v296_v0 = vmul.f32 %v918_v62, %v918_v62  ;;  %720 = vmatpush3.bf16.msra.mxu0 %v719_v59 }
 0x12b   :  { %721 = vmatprep.subr.bf16.mxu0 %v823_v40 }
 0x12c   :  { %v722_v1 = vpack.c.bf16 %v297_v61, %v296_v0  ;;  %v926_v2 = vpop.f32.mrb[8].mxu0  ;;  %699 = vmatpush3.bf16.msra.mxu1 %v698_v63 }
 0x12d   :  { %v299_v3 = vmul.f32 %v926_v2, %v926_v2  ;;  %v930_v4 = vpop.f32.mrb[9].mxu0  ;;  %700 = vmatprep.subr.bf16.mxu1 %v823_v40 }
 0x12e   :  { %v701_v5 = vpack.c.bf16 %v926_v2, %v930_v4  ;;  %v298_v6 = vmul.f32 %v930_v4, %v930_v4  ;;  %723 = vmatpush3.bf16.msra.mxu0 %v722_v1 }
 0x12f   :  { %724 = vmatprep.subr.bf16.mxu0 %v823_v40 }
 0x130   :  { %v725_v7 = vpack.c.bf16 %v299_v3, %v298_v6  ;;  %v938_v8 = vpop.f32.mrb[10].mxu0  ;;  %702 = vmatpush3.bf16.msra.mxu1 %v701_v5 }
 0x131   :  { %v301_v9 = vmul.f32 %v938_v8, %v938_v8  ;;  %v942_v10 = vpop.f32.mrb[11].mxu0  ;;  %703 = vmatprep.subr.bf16.mxu1 %v823_v40 }
 0x132   :  { %v704_v11 = vpack.c.bf16 %v938_v8, %v942_v10  ;;  %v300_v12 = vmul.f32 %v942_v10, %v942_v10  ;;  %726 = vmatpush3.bf16.msra.mxu0 %v725_v7 }
 0x133   :  { %727 = vmatprep.subr.bf16.mxu0 %v823_v40 }
 0x134   :  { %v728_v13 = vpack.c.bf16 %v301_v9, %v300_v12  ;;  %v582_v14 = vpop.f32.mrb[12].mxu0  ;;  %705 = vmatpush3.bf16.msra.mxu1 %v704_v11 }
 0x135   :  { %v303_v15 = vmul.f32 %v582_v14, %v582_v14  ;;  %v201_v16 = vpop.f32.mrb[13].mxu0  ;;  %706 = vmatprep.subr.bf16.mxu1 %v823_v40 }
 0x136   :  { %v707_v17 = vpack.c.bf16 %v582_v14, %v201_v16  ;;  %v302_v18 = vmul.f32 %v201_v16, %v201_v16  ;;  %729 = vmatpush3.bf16.msra.mxu0 %v728_v13 }
 0x137   :  { %730 = vmatprep.subr.bf16.mxu0 %v823_v40 }
 0x138   :  { %v731_v19 = vpack.c.bf16 %v303_v15, %v302_v18  ;;  %v585_v20 = vpop.f32.mrb[14].mxu0  ;;  %708 = vmatpush3.bf16.msra.mxu1 %v707_v17 }
 0x139   :  { %v305_v21 = vmul.f32 %v585_v20, %v585_v20  ;;  %v211_v22 = vpop.f32.mrb[15].mxu0  ;;  %709 = vmatprep.subr.bf16.mxu1 %v823_v40 }
 0x13a   :  { %v710_v23 = vpack.c.bf16 %v585_v20, %v211_v22  ;;  %v304_v24 = vmul.f32 %v211_v22, %v211_v22  ;;  %732 = vmatpush3.bf16.msra.mxu0 %v731_v19 }
 0x13b   :  { %733 = vmatprep.subr.bf16.mxu0 %v823_v40  ;;  %v392_v40 = vsub.s32 0, %v391_v38 }
 0x13c   :  { %v734_v25 = vpack.c.bf16 %v305_v21, %v304_v24  ;;  %711 = vmatpush3.bf16.msra.mxu1 %v710_v23 }
 0x13e   :  { %735 = vmatpush3.bf16.msra.mxu0 %v734_v25 }
 0x13f   :  { %619 = vmatmul.mubr.f32.vlgmr.msra.gmra.mrb[0].mxu1 %v826_v26 }
 0x141   :  { %654 = vmatmul.mubr.f32.vlgmr.msra.gmra.mrb[16].mxu0 %v826_v26 }
 0x212   :  { %v286_v27 = vpop.f32.mrb[0].mxu1 }
 0x213   :  { %v376_v28 = vmul.f32 0.0078125, %v286_v27  ;;  %v620_v29 = vpop.f32.mrb[1].mxu1 }
 0x214   :  { %v372_v30 = vpop.f32.mrb[16].mxu0 }
 0x215   :  { %v378_v31 = vmul.f32 %v376_v28, %v376_v28  ;;  %v377_v32 = vmul.f32 0.0078125, %v372_v30  ;;  %v655_v33 = vpop.f32.mrb[17].mxu0 }
 0x217   :  { %v379_v34 = vsub.f32 %v377_v32, %v378_v31 }
 0x219   :  { %v380_v35 = vmax.f32 %v379_v34, 0.0 }
 0x21b   :  { %v382_v36 = vadd.f32 1e-05, %v380_v35 }
 0x21d   :  { %745 = vrsqrt.f32 %v382_v36 }
 0x227   :  { %v746_v41 = vpop.eup %745 }
 0x228   :  { %v384_v43 = vmul.f32 %v746_v41, %v381_v39 }
 0x22a   :  { %v385_v45 = vmul.f32 %v384_v43, %v376_v28  ;;  %v393_v46 = vrot.slane %v384_v43, %v392_v40 }
 0x22c   :  { %v387_v49 = vrot.slane %v385_v45, 7  ;;  %v394_v51 = vmul.f32 %v393_v46, %v884_v44  ;;  %v395_v52 = vmul.f32 %v880_v42, %v393_v46  ;;  %v396_v53 = vmul.f32 %v393_v46, %v894_v50 }
 0x22d   :  { %v397_v55 = vmul.f32 %v890_v48, %v393_v46  ;;  %v398_v57 = vmul.f32 %v393_v46, %v906_v56  ;;  %v399_v58 = vmul.f32 %v902_v54, %v393_v46  ;;  %v400_v59 = vmul.f32 %v393_v46, %v918_v62 }
 0x22e   :  { %v389_v61 = vsub.f32 %v381_v39, %v387_v49  ;;  %v401_v63 = vmul.f32 %v914_v60, %v393_v46  ;;  %v402_v0 = vmul.f32 %v393_v46, %v930_v4  ;;  %v403_v1 = vmul.f32 %v926_v2, %v393_v46 }
 0x22f   :  { %v404_v44 = vmul.f32 %v393_v46, %v942_v10  ;;  %v405_v42 = vmul.f32 %v938_v8, %v393_v46  ;;  %v406_v50 = vmul.f32 %v393_v46, %v201_v16  ;;  %v407_v3 = vmul.f32 %v582_v14, %v393_v46 }
 0x230   :  { %v413_v48 = vrot.slane %v389_v61, %v412_v47  ;;  %v408_v5 = vmul.f32 %v393_v46, %v211_v22  ;;  %v409_v56 = vmul.f32 %v585_v20, %v393_v46 }
 0x232   :  { %v414_v6 = vadd.f32 %v413_v48, %v394_v51  ;;  %v415_v54 = vadd.f32 %v413_v48, %v395_v52  ;;  %v416_v7 = vadd.f32 %v413_v48, %v396_v53  ;;  %v417_v62 = vadd.f32 %v413_v48, %v397_v55 }
 0x233   :  { %v418_v60 = vadd.f32 %v413_v48, %v398_v57  ;;  %v419_v9 = vadd.f32 %v413_v48, %v399_v58  ;;  %v420_v4 = vadd.f32 %v413_v48, %v400_v59  ;;  %v421_v11 = vadd.f32 %v413_v48, %v401_v63 }
 0x234   :  { %v422_v2 = vadd.f32 %v413_v48, %v402_v0  ;;  %v423_v12 = vadd.f32 %v413_v48, %v403_v1  ;;  %v424_v10 = vadd.f32 %v413_v48, %v404_v44  ;;  %v425_v13 = vadd.f32 %v413_v48, %v405_v42  ;;  %430 = vst [vmem:[#allocation7] sm:$0xff] %v414_v6 }
 0x235   :  { %431 = vst [vmem:[#allocation7 + $0x8] sm:$0xff] %v415_v54  ;;  %432 = vst [vmem:[#allocation7 + $0x10] sm:$0xff] %v416_v7  ;;  %v426_v8 = vadd.f32 %v413_v48, %v406_v50  ;;  %v427_v14 = vadd.f32 %v413_v48, %v407_v3  ;;  %v428_v15 = vadd.f32 %v413_v48, %v408_v5 }
 0x236   :  { %433 = vst [vmem:[#allocation7 + $0x18] sm:$0xff] %v417_v62  ;;  %v429_v16 = vadd.f32 %v413_v48, %v409_v56  ;;  %434 = vst [vmem:[#allocation7 + $0x20] sm:$0xff] %v418_v60 }
 0x237   :  { %435 = vst [vmem:[#allocation7 + $0x28] sm:$0xff] %v419_v9  ;;  %436 = vst [vmem:[#allocation7 + $0x30] sm:$0xff] %v420_v4 }
 0x238   :  { %437 = vst [vmem:[#allocation7 + $0x38] sm:$0xff] %v421_v11  ;;  %438 = vst [vmem:[#allocation7 + $0x40] sm:$0xff] %v422_v2 }
 0x239   :  { %439 = vst [vmem:[#allocation7 + $0x48] sm:$0xff] %v423_v12  ;;  %440 = vst [vmem:[#allocation7 + $0x50] sm:$0xff] %v424_v10 }
 0x23a   :  { %441 = vst [vmem:[#allocation7 + $0x58] sm:$0xff] %v425_v13  ;;  %442 = vst [vmem:[#allocation7 + $0x60] sm:$0xff] %v426_v8 }
 0x23b   :  { %443 = vst [vmem:[#allocation7 + $0x68] sm:$0xff] %v427_v14  ;;  %444 = vst [vmem:[#allocation7 + $0x70] sm:$0xff] %v428_v15 }
 0x23c   :  { %445 = vst [vmem:[#allocation7 + $0x78] sm:$0xff] %v429_v16 }
 0x23d   :  { %802 = shalt.err (!%p799_p6)
}
 0x23e   :  { %s803_s15 = scalar_lea.hbm %s987_s3, 2048 }
 0x23f   :  { %p804_p7 = scmp.ne.s32.totalorder %s987_s3, %s803_s15  ;;  %p807_p8 = scmp.lt.u32.totalorder %s803_s15, %s987_s3 }
 0x241   :  { %p809_p9 = pnand %p807_p8, %p804_p7 }
 0x243   :  { %812 = shalt.err (!%p809_p9)
}
 0x244   :  { %457 = dma.vmem_to_hbm [thread:$0]  %s452_s11, 2048, %s987_s3, [#allocation4], %s820_s22, %s820_s22, %s821_s23  }
 0x245   :  { %817 = dma.done.wait [#allocation4], 2048  }
 0x246   :  { %818 = vsyncadd [#allocation4], 4294965248 }
 0x247   :  { %461 = vsyncpa [#allocation3], 1 }
 0x248   :  { %462 = vsyncpa [#allocation6], 1 }
 0x249   :  { %463 = vsyncpa [#allocation4], 1 }

</bundles_post_ra>
